<compile_context>
chip_gen: v7x
topology: tpu7x:2x2x1
jax: 0.10.0
libtpu: 0.0.40
codegen_flags: <defaults>
</compile_context>

<pallas_src>
import functools

import jax
import jax.numpy as jnp
from jax.experimental import pallas as pl
from jax.experimental.pallas import tpu as pltpu

_LANE = 128      # lane width (last-dim alignment)
_SUBLANE = 8     # sublane width (second-to-last-dim alignment)


def _round_up(x, m):
    return ((x + m - 1) // m) * m


def _mlp_kernel(*refs, n_layers):
    """Fused MLP on one batch tile: chain of (x @ W_t + b) with ReLU between.

    refs = (x_ref, w0_ref, b0_ref, ..., w_{L-1}_ref, b_{L-1}_ref, o_ref)
    Weights are pre-transposed (in, out), zero-padded and bf16; biases f32.
    All intermediates live in VMEM / vregs only.
    """
    x_ref = refs[0]
    o_ref = refs[1 + 2 * n_layers]

    z = x_ref[...].astype(jnp.float32)
    for i in range(n_layers):
        w_ref = refs[1 + 2 * i]
        b_ref = refs[2 + 2 * i]
        # bf16 x bf16 -> f32 accumulation on the MXU (native on all gens).
        acc = jnp.dot(z.astype(w_ref.dtype), w_ref[...],
                      preferred_element_type=jnp.float32)
        z = acc + b_ref[...]               # f32 bias epilogue, (1,N) broadcast
        if i < n_layers - 1:
            z = jnp.maximum(z, 0.0)        # f32 ReLU (VPU, hides under MXU)
    o_ref[...] = z.astype(o_ref.dtype)


def init_linear_params(key, layers, output_dim=48, base_model="resnet18",
                       weight_dtype=jnp.bfloat16):
    """Build the weight/bias stack, mirroring the PyTorch __init__.

    Weights are stored pre-transposed (in, out), zero-padded to lane-dense
    shapes, and cast to `weight_dtype` (default bf16 for the MXU-native
    path).  Biases stay f32.  Returns (params, meta) with
    meta[i] = (in_dim, out_dim, in_pad, out_pad).
    """
    dims = list(layers)
    if base_model == "resnet50":
        dims.insert(0, 2048)
    elif base_model == "resnet18":
        dims.insert(0, 512)
    else:
        raise ValueError("Invalid base model")
    dims.append(output_dim)

    params, meta = [], []
    for i in range(len(dims) - 1):
        fan_in, fan_out = dims[i], dims[i + 1]
        key, kw, kb = jax.random.split(key, 3)
        # PyTorch nn.Linear default init: U(-1/sqrt(fan_in), 1/sqrt(fan_in))
        bound = 1.0 / float(fan_in) ** 0.5
        w = jax.random.uniform(kw, (fan_out, fan_in), jnp.float32, -bound, bound)
        b = jax.random.uniform(kb, (fan_out,), jnp.float32, -bound, bound)

        in_p = _round_up(fan_in, _LANE)
        out_p = _round_up(fan_out, _LANE)
        w_t = (jnp.zeros((in_p, out_p), jnp.float32)
               .at[:fan_in, :fan_out].set(w.T)
               .astype(weight_dtype))
        b2 = jnp.zeros((1, out_p), jnp.float32).at[0, :fan_out].set(b)

        params.append((w_t, b2))
        meta.append((fan_in, fan_out, in_p, out_p))
    return params, meta


def _pick_batch_tile(M, in0_p, tile_m):
    """Pick the batch tile size tm."""
    m_small = _round_up(max(M, 1), _SUBLANE)
    if m_small <= 64:
        tm = m_small                                   # tiny: single step
    elif m_small <= 2 * tile_m:
        # Moderate batch: force >=2 grid steps so both v7x TensorCores get
        # work (no cost on the single-TC v5e/v6e).
        tm = _round_up((m_small + 1) // 2, _SUBLANE)
    else:
        tm = tile_m
    # v5e scoped-VMEM guard (16 MiB default): keep each double-buffered x
    # input block <= 4 MiB (matters for resnet50's 2048-wide input).
    cap = max(_SUBLANE,
              ((4 * 1024 * 1024) // (in0_p * 4)) // _SUBLANE * _SUBLANE)
    return min(tm, cap)


def linear_forward(params, meta, x, *, tile_m=512):
    """Forward pass of the fused Linear MLP: Linear -> ReLU -> ... -> Linear.

    x: (M, in_dim) float32.  Returns (M, output_dim) float32.
    """
    M, K = x.shape
    in0, _, in0_p, _ = meta[0]
    assert K == in0, (K, in0)
    out_last, out_last_p = meta[-1][1], meta[-1][3]
    n_layers = len(params)

    tm = _pick_batch_tile(M, in0_p, tile_m)
    M_p = _round_up(max(M, 1), tm)

    # Pad only when needed: the input dim (512 / 2048) is already lane-dense,
    # so this only pads the ragged batch tail.  Zero rows/cols propagate as
    # zeros through every layer (padded weight rows & biases are zero).
    x_p = x
    if (M_p, in0_p) != (M, K):
        x_p = jnp.zeros((M_p, in0_p), x.dtype).at[:M, :K].set(x)

    kernel = functools.partial(_mlp_kernel, n_layers=n_layers)

    in_specs = [pl.BlockSpec((tm, in0_p), lambda i: (i, 0))]
    flat_inputs = [x_p]
    weight_bytes = 0
    flops = 0
    for (w_t, b2), (_, _, in_p, out_p) in zip(params, meta):
        # Constant block index -> weights/biases resident in VMEM across all
        # batch-tile grid steps.
        # TODO(synk): pipeline_mode=pl.Buffered(1) on these grid-invariant
        # operands would drop the redundant second buffer; only matters if
        # layer widths grow toward the scoped-VMEM limit.
        in_specs.append(pl.BlockSpec((in_p, out_p), lambda i: (0, 0)))
        in_specs.append(pl.BlockSpec((1, out_p), lambda i: (0, 0)))
        flat_inputs += [w_t, b2]
        weight_bytes += (w_t.size * w_t.dtype.itemsize
                         + b2.size * b2.dtype.itemsize)
        flops += 2 * M_p * in_p * out_p

    bytes_accessed = (x_p.size * x_p.dtype.itemsize
                      + weight_bytes
                      + M_p * out_last_p * x.dtype.itemsize)

    out_padded = pl.pallas_call(
        kernel,
        out_shape=jax.ShapeDtypeStruct((M_p, out_last_p), x.dtype),
        grid=(M_p // tm,),
        in_specs=in_specs,
        out_specs=pl.BlockSpec((tm, out_last_p), lambda i: (i, 0)),
        compiler_params=pltpu.CompilerParams(
            # Batch-tile axis is independent -> pipelined, and (on v7x)
            # grid steps shard across the 2 TensorCores.
            dimension_semantics=("parallel",),
        ),
        cost_estimate=pl.CostEstimate(
            flops=flops, transcendentals=0, bytes_accessed=bytes_accessed),
    )(*flat_inputs)

    # TODO(synk): for large M, fuse this column slice into the consumer (or
    # keep the padded 128-wide slab) to avoid an extra HBM round trip.
    return out_padded[:M, :out_last]


if __name__ == "__main__":
    key = jax.random.PRNGKey(0)
    k_params, k_x1, k_x2 = jax.random.split(key, 3)

    # layers=[256, 128]  ->  512 -> 256 -> 128 -> 48 MLP (resnet18 base)
    layers = [256, 128]
    output_dim = 48
    params, meta = init_linear_params(
        k_params, layers, output_dim=output_dim, base_model="resnet18")

    def reference(xin):
        # Emulates kernel numerics: bf16-rounded weights + activations into
        # each matmul, f32 accumulation, f32 bias / ReLU.
        ref = xin
        for i, ((w_t, b2), (fan_in, fan_out, _, _)) in enumerate(
                zip(params, meta)):
            w = w_t[:fan_in, :fan_out].astype(jnp.float32)
            b = b2[0, :fan_out]
            a = ref.astype(jnp.bfloat16).astype(jnp.float32)
            ref = a @ w + b
            if i < len(params) - 1:
                ref = jnp.maximum(ref, 0.0)
        return ref

    # Tiny batch: single grid step (latency / weight-DMA bound path).
    x1 = jax.random.normal(k_x1, (2, 512), dtype=jnp.float32)
    y1 = jax.block_until_ready(linear_forward(params, meta, x1))
    assert y1.shape == (2, output_dim), y1.shape
    assert jnp.allclose(y1, reference(x1), atol=1e-2, rtol=1e-2)

    # Moderate batch: exercises the >=2-grid-step split + ragged-tail padding.
    x2 = jax.random.normal(k_x2, (300, 512), dtype=jnp.float32)
    y2 = jax.block_until_ready(linear_forward(params, meta, x2))
    assert y2.shape == (300, output_dim), y2.shape
    assert jnp.allclose(y2, reference(x2), atol=1e-2, rtol=1e-2)

    print("KERNEL_OK")
</pallas_src>

<mosaic_0001>
module attributes {stable_mosaic.version = 11 : i64} {
  func.func @_mlp_kernel(%arg0: i32, %arg1: memref<8x512xf32, #tpu.memory_space<vmem>>, %arg2: memref<512x256xbf16, #tpu.memory_space<vmem>>, %arg3: memref<1x256xf32, #tpu.memory_space<vmem>>, %arg4: memref<256x128xbf16, #tpu.memory_space<vmem>>, %arg5: memref<1x128xf32, #tpu.memory_space<vmem>>, %arg6: memref<128x128xbf16, #tpu.memory_space<vmem>>, %arg7: memref<1x128xf32, #tpu.memory_space<vmem>>, %arg8: memref<8x128xf32, #tpu.memory_space<vmem>>) attributes {dimension_semantics = [#tpu.dimension_semantics<parallel>], iteration_bounds = array<i64: 1>, scalar_prefetch = 0 : i64, scratch_operands = 0 : i64, tpu.core_type = #tpu.core_type<tc>, window_params = [{transform_indices = @transform_0, window_bounds = array<i64: 8, 512>}, {pipeline_mode = #tpu.pipeline_mode<synchronous>, transform_indices = @transform_1, window_bounds = array<i64: 512, 256>}, {pipeline_mode = #tpu.pipeline_mode<synchronous>, transform_indices = @transform_2, window_bounds = array<i64: 1, 256>}, {pipeline_mode = #tpu.pipeline_mode<synchronous>, transform_indices = @transform_3, window_bounds = array<i64: 256, 128>}, {pipeline_mode = #tpu.pipeline_mode<synchronous>, transform_indices = @transform_4, window_bounds = array<i64: 1, 128>}, {pipeline_mode = #tpu.pipeline_mode<synchronous>, transform_indices = @transform_5, window_bounds = array<i64: 128, 128>}, {pipeline_mode = #tpu.pipeline_mode<synchronous>, transform_indices = @transform_6, window_bounds = array<i64: 1, 128>}, {transform_indices = @transform_7, window_bounds = array<i64: 8, 128>}]} {
    %c0 = arith.constant 0 : index
    %c0_0 = arith.constant 0 : index
    %0 = vector.load %arg1[%c0, %c0_0] : memref<8x512xf32, #tpu.memory_space<vmem>>, vector<8x512xf32>
    %1 = arith.truncf %0 : vector<8x512xf32> to vector<8x512xbf16>
    %c0_1 = arith.constant 0 : index
    %c0_2 = arith.constant 0 : index
    %2 = vector.load %arg2[%c0_1, %c0_2] : memref<512x256xbf16, #tpu.memory_space<vmem>>, vector<512x256xbf16>
    %cst = arith.constant dense<0.000000e+00> : vector<8x256xf32>
    %3 = tpu.matmul %1, %2, %cst {dimension_numbers = #tpu.dot_dimension_numbers<[1], [0], [0], [1], [0, 0, 1, 1], [], []>} : vector<8x512xbf16>, vector<512x256xbf16>, vector<8x256xf32> -> vector<8x256xf32>
    %c0_3 = arith.constant 0 : index
    %c0_4 = arith.constant 0 : index
    %4 = vector.load %arg3[%c0_3, %c0_4] : memref<1x256xf32, #tpu.memory_space<vmem>>, vector<1x256xf32>
    %5 = vector.broadcast %4 : vector<1x256xf32> to vector<8x256xf32>
    %6 = arith.addf %3, %5 : vector<8x256xf32>
    %cst_5 = arith.constant 0.000000e+00 : f32
    %7 = vector.broadcast %cst_5 : f32 to vector<8x256xf32>
    %8 = arith.maximumf %6, %7 : vector<8x256xf32>
    %9 = arith.truncf %8 : vector<8x256xf32> to vector<8x256xbf16>
    %c0_6 = arith.constant 0 : index
    %c0_7 = arith.constant 0 : index
    %10 = vector.load %arg4[%c0_6, %c0_7] : memref<256x128xbf16, #tpu.memory_space<vmem>>, vector<256x128xbf16>
    %cst_8 = arith.constant dense<0.000000e+00> : vector<8x128xf32>
    %11 = tpu.matmul %9, %10, %cst_8 {dimension_numbers = #tpu.dot_dimension_numbers<[1], [0], [0], [1], [0, 0, 1, 1], [], []>} : vector<8x256xbf16>, vector<256x128xbf16>, vector<8x128xf32> -> vector<8x128xf32>
    %c0_9 = arith.constant 0 : index
    %c0_10 = arith.constant 0 : index
    %12 = vector.load %arg5[%c0_9, %c0_10] : memref<1x128xf32, #tpu.memory_space<vmem>>, vector<1x128xf32>
    %13 = vector.broadcast %12 : vector<1x128xf32> to vector<8x128xf32>
    %14 = arith.addf %11, %13 : vector<8x128xf32>
    %cst_11 = arith.constant 0.000000e+00 : f32
    %15 = vector.broadcast %cst_11 : f32 to vector<8x128xf32>
    %16 = arith.maximumf %14, %15 : vector<8x128xf32>
    %17 = arith.truncf %16 : vector<8x128xf32> to vector<8x128xbf16>
    %c0_12 = arith.constant 0 : index
    %c0_13 = arith.constant 0 : index
    %18 = vector.load %arg6[%c0_12, %c0_13] : memref<128x128xbf16, #tpu.memory_space<vmem>>, vector<128x128xbf16>
    %cst_14 = arith.constant dense<0.000000e+00> : vector<8x128xf32>
    %19 = tpu.matmul %17, %18, %cst_14 {dimension_numbers = #tpu.dot_dimension_numbers<[1], [0], [0], [1], [0, 0, 1, 1], [], []>} : vector<8x128xbf16>, vector<128x128xbf16>, vector<8x128xf32> -> vector<8x128xf32>
    %c0_15 = arith.constant 0 : index
    %c0_16 = arith.constant 0 : index
    %20 = vector.load %arg7[%c0_15, %c0_16] : memref<1x128xf32, #tpu.memory_space<vmem>>, vector<1x128xf32>
    %21 = vector.broadcast %20 : vector<1x128xf32> to vector<8x128xf32>
    %22 = arith.addf %19, %21 : vector<8x128xf32>
    %c0_17 = arith.constant 0 : index
    %c0_18 = arith.constant 0 : index
    %23 = vector.load %arg8[%c0_17, %c0_18] : memref<8x128xf32, #tpu.memory_space<vmem>>, vector<8x128xf32>
    tpu.vector_store %arg8[%c0_17, %c0_18], %22 {strides = array<i32>} : memref<8x128xf32, #tpu.memory_space<vmem>>, vector<8x128xf32>,
    return
  }
  func.func @transform_0(%arg0: i32) -> (i32, i32) {
    %c0_i32 = arith.constant 0 : i32
    %c0_i32_0 = arith.constant 0 : i32
    return %arg0, %c0_i32 : i32, i32
  }
  func.func @transform_1(%arg0: i32) -> (i32, i32) {
    %c0_i32 = arith.constant 0 : i32
    %c0_i32_0 = arith.constant 0 : i32
    %c0_i32_1 = arith.constant 0 : i32
    return %c0_i32, %c0_i32_0 : i32, i32
  }
  func.func @transform_2(%arg0: i32) -> (i32, i32) {
    %c0_i32 = arith.constant 0 : i32
    %c0_i32_0 = arith.constant 0 : i32
    %c0_i32_1 = arith.constant 0 : i32
    return %c0_i32, %c0_i32_0 : i32, i32
  }
  func.func @transform_3(%arg0: i32) -> (i32, i32) {
    %c0_i32 = arith.constant 0 : i32
    %c0_i32_0 = arith.constant 0 : i32
    %c0_i32_1 = arith.constant 0 : i32
    return %c0_i32, %c0_i32_0 : i32, i32
  }
  func.func @transform_4(%arg0: i32) -> (i32, i32) {
    %c0_i32 = arith.constant 0 : i32
    %c0_i32_0 = arith.constant 0 : i32
    %c0_i32_1 = arith.constant 0 : i32
    return %c0_i32, %c0_i32_0 : i32, i32
  }
  func.func @transform_5(%arg0: i32) -> (i32, i32) {
    %c0_i32 = arith.constant 0 : i32
    %c0_i32_0 = arith.constant 0 : i32
    %c0_i32_1 = arith.constant 0 : i32
    return %c0_i32, %c0_i32_0 : i32, i32
  }
  func.func @transform_6(%arg0: i32) -> (i32, i32) {
    %c0_i32 = arith.constant 0 : i32
    %c0_i32_0 = arith.constant 0 : i32
    %c0_i32_1 = arith.constant 0 : i32
    return %c0_i32, %c0_i32_0 : i32, i32
  }
  func.func @transform_7(%arg0: i32) -> (i32, i32) {
    %c0_i32 = arith.constant 0 : i32
    %c0_i32_0 = arith.constant 0 : i32
    return %arg0, %c0_i32 : i32, i32
  }
}

</mosaic_0001>

<bundles_post_ra>
// kernel: tpu_custom_call.1
= control target key start
LH: loop header
LB: loop body
LE: loop exit
PB: predicated region body
PF: predicated region fallthrough
CT: control target
= control target key end

     0   :  { %12 = vsyncpa [#allocation3], 0  ;;  %s1393_s0 = inlined_call_operand.hbm [shape: f32[8,512], index: 0, kind: input, shape index: {}]   ;;  %s1394_s1 = inlined_call_operand.hbm [shape: bf16[512,256], index: 1, kind: input, shape index: {}]   ;;  %s1395_s2 = inlined_call_operand.vmem [shape: f32[1,256], index: 2, kind: input, shape index: {}]   ;;  %s1396_s3 = inlined_call_operand.hbm [shape: bf16[256,128], index: 3, kind: input, shape index: {}]   ;;  %s1397_s4 = inlined_call_operand.vmem [shape: f32[1,128], index: 4, kind: input, shape index: {}]   ;;  %s1398_s5 = inlined_call_operand.hbm [shape: bf16[128,128], index: 5, kind: input, shape index: {}]   ;;  %s1399_s6 = inlined_call_operand.vmem [shape: f32[1,128], index: 6, kind: input, shape index: {}]   ;;  %s1400_s7 = inlined_call_operand.hbm [shape: f32[8,128], index: 7, kind: output, shape index: {}]  }
   0x1   :  { %13 = vsyncpa [#allocation6], 0 }
   0x2   :  { %14 = vsyncpa [#allocation9], 0 }
   0x3   :  { %15 = vsyncpa [#allocation4], 0  ;;  %s1273_s24 = smov [#allocation5]   ;;  %s1155_s28 = scalar_lea.hbm %s1394_s1, 8192 }
   0x4   :  { %s31_s25 = sshll.u32 %s1273_s24, 4  ;;  %p1156_p0 = scmp.ne.s32.totalorder %s1394_s1, %s1155_s28  ;;  %s32_s25 = int_to_ptr.vmem [resolvable:$true] %s31_s25 }
   0x5   :  { %p1159_p1 = scmp.lt.u32.totalorder %s1155_s28, %s1394_s1 }
   0x7   :  { %p1161_p2 = pnand %p1159_p1, %p1156_p0 }
   0x9   :  { %1164 = shalt.err (!%p1161_p2)
}
   0xa   :  { %s1165_s10 = scalar_lea.vmem %s32_s25, 8192  ;;  %p1170_p4 = scmp.lt.s32.totalorder %s32_s25, %s32_s25 }
   0xb   :  { %p1166_p3 = scmp.ne.s32.totalorder %s32_s25, %s1165_s10  ;;  %p1171_p5 = scmp.lt.s32.totalorder %s1165_s10, %s1165_s10 }
   0xd   :  { %p1172_p6 = por %p1171_p5, %p1170_p4 }
   0xf   :  { %p1173_p7 = pnand %p1172_p6, %p1166_p3 }
  0x11   :  { %1176 = shalt.err (!%p1173_p7)
}
  0x12   :  { %s1274_s11 = smov 128   ;;  %s1275_s12 = smov 8  }
  0x13   :  { %37 = dma.hbm_to_vmem [thread:$0]  %s1394_s1, 8192, %s32_s25, [#allocation6], %s1274_s11, %s1274_s11, %s1275_s12  }
  0x14   :  { %s1276_s15 = smov [#allocation2]   ;;  %s1277_s17 = smov [#allocation7]  }
  0x15   :  { %s22_s16 = sshll.u32 %s1276_s15, 4  ;;  %s45_s18 = sshll.u32 %s1277_s17, 4  ;;  %s23_s16 = int_to_ptr.vmem [resolvable:$true] %s22_s16  ;;  %s46_s18 = int_to_ptr.vmem [resolvable:$true] %s45_s18 }
  0x16   :  { %s1177_s21 = scalar_lea.hbm %s1393_s0, 512 }
  0x17   :  { %p1178_p8 = scmp.ne.s32.totalorder %s1393_s0, %s1177_s21  ;;  %p1181_p9 = scmp.lt.u32.totalorder %s1177_s21, %s1393_s0 }
  0x19   :  { %p1183_p10 = pnand %p1181_p9, %p1178_p8 }
  0x1b   :  { %1186 = shalt.err (!%p1183_p10)
}
  0x1c   :  { %s1187_s1 = scalar_lea.vmem %s23_s16, 512  ;;  %p1192_p12 = scmp.lt.s32.totalorder %s23_s16, %s23_s16 }
  0x1d   :  { %p1188_p11 = scmp.ne.s32.totalorder %s23_s16, %s1187_s1  ;;  %p1193_p13 = scmp.lt.s32.totalorder %s1187_s1, %s1187_s1 }
  0x1f   :  { %p1194_p0 = por %p1193_p13, %p1192_p12 }
  0x21   :  { %p1195_p1 = pnand %p1194_p0, %p1188_p11 }
  0x23   :  { %1198 = shalt.err (!%p1195_p1)
}
  0x24   :  { %25 = dma.hbm_to_vmem [thread:$0]  %s1393_s0, 512, %s23_s16, [#allocation3]  }
  0x25   :  { %s1199_s30 = scalar_lea.hbm %s1396_s3, 2048 }
  0x26   :  { %p1200_p2 = scmp.ne.s32.totalorder %s1396_s3, %s1199_s30  ;;  %p1203_p3 = scmp.lt.u32.totalorder %s1199_s30, %s1396_s3 }
  0x28   :  { %p1205_p4 = pnand %p1203_p3, %p1200_p2 }
  0x2a   :  { %1208 = shalt.err (!%p1205_p4)
}
  0x2b   :  { %s1209_s12 = scalar_lea.vmem %s46_s18, 2048  ;;  %p1214_p6 = scmp.lt.s32.totalorder %s46_s18, %s46_s18 }
  0x2c   :  { %p1210_p5 = scmp.ne.s32.totalorder %s46_s18, %s1209_s12  ;;  %p1215_p7 = scmp.lt.s32.totalorder %s1209_s12, %s1209_s12 }
  0x2e   :  { %p1216_p8 = por %p1215_p7, %p1214_p6 }
  0x30   :  { %p1217_p9 = pnand %p1216_p8, %p1210_p5 }
  0x32   :  { %1220 = shalt.err (!%p1217_p9)
}
  0x33   :  { %s1278_s0 = smov 64   ;;  %s1279_s13 = smov 4  }
  0x34   :  { %51 = dma.hbm_to_vmem [thread:$0]  %s1396_s3, 2048, %s46_s18, [#allocation6], %s1278_s0, %s1278_s0, %s1279_s13  }
  0x35   :  { %s1280_s16 = smov [#allocation8]   ;;  %s1221_s21 = scalar_lea.hbm %s1398_s5, 1024 }
  0x36   :  { %s59_s17 = sshll.u32 %s1280_s16, 4  ;;  %p1222_p10 = scmp.ne.s32.totalorder %s1398_s5, %s1221_s21  ;;  %s60_s17 = int_to_ptr.vmem [resolvable:$true] %s59_s17 }
  0x37   :  { %p1225_p11 = scmp.lt.u32.totalorder %s1221_s21, %s1398_s5 }
  0x39   :  { %p1227_p12 = pnand %p1225_p11, %p1222_p10 }
  0x3b   :  { %1230 = shalt.err (!%p1227_p12)
}
  0x3c   :  { %s1231_s1 = scalar_lea.vmem %s60_s17, 1024  ;;  %p1236_p0 = scmp.lt.s32.totalorder %s60_s17, %s60_s17 }
  0x3d   :  { %p1232_p13 = scmp.ne.s32.totalorder %s60_s17, %s1231_s1  ;;  %p1237_p1 = scmp.lt.s32.totalorder %s1231_s1, %s1231_s1 }
  0x3f   :  { %p1238_p2 = por %p1237_p1, %p1236_p0 }
  0x41   :  { %p1239_p3 = pnand %p1238_p2, %p1232_p13 }
  0x43   :  { %1242 = shalt.err (!%p1239_p3)
}
  0x44   :  { %65 = dma.hbm_to_vmem [thread:$0]  %s1398_s5, 1024, %s60_s17, [#allocation9], %s1278_s0, %s1278_s0, %s1279_s13  }
  0x45   :  { %1265 = dma.done.wait [#allocation3], 512  }
  0x46   :  { %1266 = vsyncadd [#allocation3], 4294966784 }
  0x47   :  { %1267 = dma.done.wait [#allocation6], 10240  }
  0x48   :  { %1268 = vsyncadd [#allocation6], 4294957056 }
  0x49   :  { %1269 = dma.done.wait [#allocation9], 1024  }
  0x4a   :  { %1270 = vsyncadd [#allocation9], 4294966272  ;;  %v1035_v0 = vld [vmem:[#allocation5 + $0x4] ss:$8 sps:$4 sm:$0xff]   ;;  %v1037_v1 = vld [vmem:[#allocation5] ss:$8 sps:$4 sm:$0xff]  }
  0x4b   :  { %485 = vmatprep.subr.bf16.mxu0 %v1035_v0  ;;  %v1038_v2 = vld [vmem:[#allocation5 + $0x14] ss:$8 sps:$4 sm:$0xff]   ;;  %v1040_v3 = vld [vmem:[#allocation5 + $0x10] ss:$8 sps:$4 sm:$0xff]   ;;  %v1041_v4 = vld [vmem:[#allocation5 + $0x24] ss:$8 sps:$4 sm:$0xff]  }
  0x4c   :  { %486 = vmatpush1.bf16.msra.mxu0 %v1037_v1  ;;  %v1043_v5 = vld [vmem:[#allocation5 + $0x20] ss:$8 sps:$4 sm:$0xff]   ;;  %v1044_v6 = vld [vmem:[#allocation5 + $0x34] ss:$8 sps:$4 sm:$0xff]   ;;  %v1046_v7 = vld [vmem:[#allocation5 + $0x30] ss:$8 sps:$4 sm:$0xff]  }
  0x4d   :  { %487 = vmatprep.subr.bf16.mxu0 %v1038_v2  ;;  %v1047_v8 = vld [vmem:[#allocation5 + $0x44] ss:$8 sps:$4 sm:$0xff]   ;;  %v1049_v9 = vld [vmem:[#allocation5 + $0x40] ss:$8 sps:$4 sm:$0xff]   ;;  %v1050_v10 = vld [vmem:[#allocation5 + $0x54] ss:$8 sps:$4 sm:$0xff]  }
  0x4e   :  { %v1052_v11 = vld [vmem:[#allocation5 + $0x50] ss:$8 sps:$4 sm:$0xff]   ;;  %v1053_v12 = vld [vmem:[#allocation5 + $0x64] ss:$8 sps:$4 sm:$0xff]   ;;  %v1055_v15 = vld [vmem:[#allocation5 + $0x60] ss:$8 sps:$4 sm:$0xff]  }
  0x4f   :  { %v82_v13 = vld [vmem:[#allocation2 + $0x8] sm:$0xff]  ;;  %v1056_v16 = vld [vmem:[#allocation5 + $0x74] ss:$8 sps:$4 sm:$0xff]   ;;  %v1058_v17 = vld [vmem:[#allocation5 + $0x70] ss:$8 sps:$4 sm:$0xff]   ;;  %vm1282_vm0 = vmmov 0  }
  0x50   :  { %488 = vmatpush1.bf16.msra.mxu0 %v1040_v3  ;;  %v86_v14 = vpack.c.bf16 %v82_v13, %v82_v13  ;;  %v1059_v18 = vld [vmem:[#allocation5 + $0x84] ss:$8 sps:$4 sm:$0xff]   ;;  %v1061_v19 = vld [vmem:[#allocation5 + $0x80] ss:$8 sps:$4 sm:$0xff]   ;;  %v1062_v20 = vld [vmem:[#allocation5 + $0x94] ss:$8 sps:$4 sm:$0xff]  }
  0x51   :  { %489 = vmatprep.subr.bf16.mxu0 %v1041_v4  ;;  %v1064_v21 = vld [vmem:[#allocation5 + $0x90] ss:$8 sps:$4 sm:$0xff]   ;;  %v1065_v22 = vld [vmem:[#allocation5 + $0xa4] ss:$8 sps:$4 sm:$0xff]   ;;  %v1067_v23 = vld [vmem:[#allocation5 + $0xa0] ss:$8 sps:$4 sm:$0xff]  }
  0x52   :  { %517 = vmatprep.mubr.bf16.mxu0 %v86_v14  ;;  %v1068_v24 = vld [vmem:[#allocation5 + $0xb4] ss:$8 sps:$4 sm:$0xff]   ;;  %v1070_v25 = vld [vmem:[#allocation5 + $0xb0] ss:$8 sps:$4 sm:$0xff]   ;;  %v1071_v26 = vld [vmem:[#allocation5 + $0xc4] ss:$8 sps:$4 sm:$0xff]  }
  0x53   :  { %v1131_v27 = vld [vmem:[#allocation7 + $0x40] sm:$0xff]   ;;  %v1074_v30 = vld [vmem:[#allocation5 + $0xd4] ss:$8 sps:$4 sm:$0xff]   ;;  %v1133_v31 = vld [vmem:[#allocation7 + $0x48] sm:$0xff]   ;;  %s1283_s30 = smov [#allocation10]  }
  0x54   :  { %490 = vmatpush1.bf16.msra.mxu0 %v1043_v5  ;;  %v1073_v28 = vld [vmem:[#allocation5 + $0xc0] ss:$8 sps:$4 sm:$0xff]   ;;  %967 = vmatprep.subr.bf16.mxu1 %v1131_v27  ;;  %v1135_v33 = vld [vmem:[#allocation7 + $0x50] sm:$0xff]   ;;  %v1077_v35 = vld [vmem:[#allocation5 + $0xe4] ss:$8 sps:$4 sm:$0xff]   ;;  %s866_s8 = sshll.u32 %s1283_s30, 4  ;;  %s867_s8 = int_to_ptr.vmem [resolvable:$true] %s866_s8 }
  0x55   :  { %491 = vmatprep.subr.bf16.mxu0 %v1044_v6  ;;  %v1132_v29 = vld [vmem:[#allocation7] sm:$0xff]   ;;  %v1134_v32 = vld [vmem:[#allocation7 + $0x8] sm:$0xff]   ;;  %v1076_v34 = vld [vmem:[#allocation5 + $0xd0] ss:$8 sps:$4 sm:$0xff]   ;;  %p1248_p5 = scmp.lt.s32.totalorder %s867_s8, %s867_s8 }
  0x56   :  { %968 = vmatpush3.bf16.msra.mxu1 %v1132_v29  ;;  %v1136_v36 = vld [vmem:[#allocation7 + $0x10] sm:$0xff]   ;;  %v1137_v37 = vld [vmem:[#allocation7 + $0x58] sm:$0xff]   ;;  %v1079_v38 = vld [vmem:[#allocation5 + $0xe0] ss:$8 sps:$4 sm:$0xff]  }
  0x57   :  { %969 = vmatprep.subr.bf16.mxu1 %v1133_v31  ;;  %v1080_v39 = vld [vmem:[#allocation5 + $0xf4] ss:$8 sps:$4 sm:$0xff]   ;;  %v1139_v41 = vld [vmem:[#allocation7 + $0x60] sm:$0xff]   ;;  %v1082_v42 = vld [vmem:[#allocation5 + $0xf0] ss:$8 sps:$4 sm:$0xff]  }
  0x58   :  { %492 = vmatpush1.bf16.msra.mxu0 %v1046_v7  ;;  %v1138_v40 = vld [vmem:[#allocation7 + $0x18] sm:$0xff]   ;;  %v81_v43 = vld [vmem:[#allocation2] sm:$0xff]  ;;  %v1141_v47 = vld [vmem:[#allocation7 + $0x68] sm:$0xff]  }
  0x59   :  { %493 = vmatprep.subr.bf16.mxu0 %v1047_v8  ;;  %v1140_v44 = vld [vmem:[#allocation7 + $0x20] sm:$0xff]   ;;  %v84_v46 = vld [vmem:[#allocation2 + $0x18] sm:$0xff]  ;;  %v85_v49 = vpack.c.bf16 %v81_v43, %v81_v43  ;;  %v1142_v52 = vld [vmem:[#allocation7 + $0x28] sm:$0xff]  }
  0x5a   :  { %970 = vmatpush3.bf16.msra.mxu1 %v1134_v32  ;;  %v1085_v45 = vld [vmem:[#allocation5 + $0x104] ss:$8 sps:$4 sm:$0xff]   ;;  %v1083_v48 = vld [vmem:[#allocation5 + $0x100] ss:$8 sps:$4 sm:$0xff]   ;;  %v88_v50 = vpack.c.bf16 %v84_v46, %v84_v46  ;;  %v1088_v51 = vld [vmem:[#allocation5 + $0x114] ss:$8 sps:$4 sm:$0xff]  }
  0x5b   :  { %971 = vmatprep.subr.bf16.mxu1 %v1135_v33  ;;  %v1086_v53 = vld [vmem:[#allocation5 + $0x110] ss:$8 sps:$4 sm:$0xff]   ;;  %v1091_v54 = vld [vmem:[#allocation5 + $0x124] ss:$8 sps:$4 sm:$0xff]   ;;  %v1089_v55 = vld [vmem:[#allocation5 + $0x120] ss:$8 sps:$4 sm:$0xff]  }
  0x5c   :  { %494 = vmatpush1.bf16.msra.mxu0 %v1049_v9  ;;  %v1094_v56 = vld [vmem:[#allocation5 + $0x134] ss:$8 sps:$4 sm:$0xff]   ;;  %v1092_v57 = vld [vmem:[#allocation5 + $0x130] ss:$8 sps:$4 sm:$0xff]   ;;  %v1097_v58 = vld [vmem:[#allocation5 + $0x144] ss:$8 sps:$4 sm:$0xff]  }
  0x5d   :  { %495 = vmatprep.subr.bf16.mxu0 %v1050_v10  ;;  %v1095_v59 = vld [vmem:[#allocation5 + $0x140] ss:$8 sps:$4 sm:$0xff]   ;;  %v1100_v60 = vld [vmem:[#allocation5 + $0x154] ss:$8 sps:$4 sm:$0xff]   ;;  %v1098_v61 = vld [vmem:[#allocation5 + $0x150] ss:$8 sps:$4 sm:$0xff]  }
  0x5e   :  { %972 = vmatpush3.bf16.msra.mxu1 %v1136_v36  ;;  %v1103_v62 = vld [vmem:[#allocation5 + $0x164] ss:$8 sps:$4 sm:$0xff]   ;;  %v1101_v63 = vld [vmem:[#allocation5 + $0x160] ss:$8 sps:$4 sm:$0xff]   ;;  %v1106_v0 = vld [vmem:[#allocation5 + $0x174] ss:$8 sps:$4 sm:$0xff]  }
  0x5f   :  { %973 = vmatprep.subr.bf16.mxu1 %v1137_v37  ;;  %v1104_v1 = vld [vmem:[#allocation5 + $0x170] ss:$8 sps:$4 sm:$0xff]   ;;  %v1109_v2 = vld [vmem:[#allocation5 + $0x184] ss:$8 sps:$4 sm:$0xff]   ;;  %v1107_v3 = vld [vmem:[#allocation5 + $0x180] ss:$8 sps:$4 sm:$0xff]  }
  0x60   :  { %496 = vmatpush1.bf16.msra.mxu0 %v1052_v11  ;;  %v1112_v4 = vld [vmem:[#allocation5 + $0x194] ss:$8 sps:$4 sm:$0xff]   ;;  %v1110_v5 = vld [vmem:[#allocation5 + $0x190] ss:$8 sps:$4 sm:$0xff]   ;;  %v1115_v6 = vld [vmem:[#allocation5 + $0x1a4] ss:$8 sps:$4 sm:$0xff]  }
  0x61   :  { %497 = vmatprep.subr.bf16.mxu0 %v1053_v12  ;;  %v1113_v7 = vld [vmem:[#allocation5 + $0x1a0] ss:$8 sps:$4 sm:$0xff]   ;;  %v1118_v8 = vld [vmem:[#allocation5 + $0x1b4] ss:$8 sps:$4 sm:$0xff]   ;;  %v1116_v9 = vld [vmem:[#allocation5 + $0x1b0] ss:$8 sps:$4 sm:$0xff]  }
  0x62   :  { %974 = vmatpush3.bf16.msra.mxu1 %v1138_v40  ;;  %v1121_v10 = vld [vmem:[#allocation5 + $0x1c4] ss:$8 sps:$4 sm:$0xff]   ;;  %v1119_v11 = vld [vmem:[#allocation5 + $0x1c0] ss:$8 sps:$4 sm:$0xff]   ;;  %v1124_v12 = vld [vmem:[#allocation5 + $0x1d4] ss:$8 sps:$4 sm:$0xff]  }
  0x63   :  { %975 = vmatprep.subr.bf16.mxu1 %v1139_v41  ;;  %v1122_v13 = vld [vmem:[#allocation5 + $0x1d0] ss:$8 sps:$4 sm:$0xff]   ;;  %v1127_v14 = vld [vmem:[#allocation5 + $0x1e4] ss:$8 sps:$4 sm:$0xff]  }
  0x64   :  { %498 = vmatpush1.bf16.msra.mxu0 %v1055_v15  ;;  %v1125_v15 = vld [vmem:[#allocation5 + $0x1e0] ss:$8 sps:$4 sm:$0xff]  }
  0x65   :  { %499 = vmatprep.subr.bf16.mxu0 %v1056_v16  ;;  %v1130_v16 = vld [vmem:[#allocation5 + $0x1f4] ss:$8 sps:$4 sm:$0xff]   ;;  %v1147_v41 = vld [vmem:[#allocation8] sm:$0xff]   ;;  %v1148_v43 = vld [vmem:[#allocation8 + $0x8] sm:$0xff]  }
  0x66   :  { %976 = vmatpush3.bf16.msra.mxu1 %v1140_v44  ;;  %v1149_v44 = vld [vmem:[#allocation8 + $0x10] sm:$0xff]   ;;  %v1151_v46 = vld [vmem:[#allocation8 + $0x20] sm:$0xff]  }
  0x67   :  { %977 = vmatprep.subr.bf16.mxu1 %v1141_v47  ;;  %v1152_v47 = vld [vmem:[#allocation8 + $0x28] sm:$0xff]  }
  0x68   :  { %500 = vmatpush1.bf16.msra.mxu0 %v1058_v17  ;;  %v1128_v17 = vld [vmem:[#allocation5 + $0x1f0] ss:$8 sps:$4 sm:$0xff]  }
  0x69   :  { %501 = vmatprep.subr.bf16.mxu0 %v1059_v18  ;;  %v83_v18 = vld [vmem:[#allocation2 + $0x10] sm:$0xff] }
  0x6a   :  { %978 = vmatpush3.bf16.msra.mxu1 %v1142_v52 }
  0x6c   :  { %502 = vmatpush1.bf16.msra.mxu0 %v1061_v19  ;;  %v87_v19 = vpack.c.bf16 %v83_v18, %v83_v18 }
  0x6d   :  { %503 = vmatprep.subr.bf16.mxu0 %v1062_v20  ;;  %v1143_v20 = vld [vmem:[#allocation7 + $0x70] sm:$0xff]  }
  0x6e   :  { %979 = vmatprep.subr.bf16.mxu1 %v1143_v20 }
  0x70   :  { %504 = vmatpush1.bf16.msra.mxu0 %v1064_v21  ;;  %v1144_v21 = vld [vmem:[#allocation7 + $0x30] sm:$0xff]  }
  0x71   :  { %505 = vmatprep.subr.bf16.mxu0 %v1065_v22  ;;  %980 = vmatpush3.bf16.msra.mxu1 %v1144_v21  ;;  %v1145_v22 = vld [vmem:[#allocation7 + $0x78] sm:$0xff]  }
  0x72   :  { %981 = vmatprep.subr.bf16.mxu1 %v1145_v22 }
  0x74   :  { %506 = vmatpush1.bf16.msra.mxu0 %v1067_v23  ;;  %v1146_v23 = vld [vmem:[#allocation7 + $0x38] sm:$0xff]  }
  0x75   :  { %507 = vmatprep.subr.bf16.mxu0 %v1068_v24  ;;  %982 = vmatpush3.bf16.msra.mxu1 %v1146_v23  ;;  %v1281_v24 = vmov 0.0  }
  0x76   :  { %998 = vmatprep.subr.bf16.mxu1 %v1281_v24 }
  0x78   :  { %508 = vmatpush1.bf16.msra.mxu0 %v1070_v25  ;;  %v155_v25 = vlaneseq }
  0x79   :  { %509 = vmatprep.subr.bf16.mxu0 %v1071_v26 }
  0x7a   :  { %v156_v26 = vshrl.u32 %v155_v25, 7 }
  0x7c   :  { %510 = vmatpush1.bf16.msra.mxu0 %v1073_v28  ;;  %v157_v27 = vsub.s32 0, %v156_v26  ;;  %v153_v28 = vld [vmem:[%s1395_s2] sm:$0x3]  ;;  %v161_v29 = vsub.s32 1, %v156_v26 }
  0x7d   :  { %511 = vmatprep.subr.bf16.mxu0 %v1074_v30 }
  0x7e   :  { %v158_v30 = vrot.slane %v153_v28, %v157_v27  ;;  %v162_v31 = vrot.slane %v153_v28, %v161_v29 }
  0x80   :  { %512 = vmatpush1.bf16.msra.mxu0 %v1076_v34 }
  0x81   :  { %513 = vmatprep.subr.bf16.mxu0 %v1077_v35 }
  0x84   :  { %514 = vmatpush1.bf16.msra.mxu0 %v1079_v38 }
  0x85   :  { %515 = vmatprep.subr.bf16.mxu0 %v1080_v39 }
  0x88   :  { %516 = vmatpush1.bf16.msra.mxu0 %v1082_v42 }
  0x89   :  { %526 = vmatprep.subr.bf16.mxu0 %v1085_v45  ;;  %v1150_v45 = vld [vmem:[#allocation8 + $0x18] sm:$0xff]  }
  0x8b   :  { %518 = vmatmul.mubr.bf16.vlgmr.msra.gmra.mrb[0].mxu0 %v85_v49  ;;  %v1154_v49 = vld [vmem:[#allocation8 + $0x38] sm:$0xff]  }
  0x8c   :  { %527 = vmatpush1.bf16.msra.mxu0 %v1083_v48  ;;  %558 = vmatprep.mubr.bf16.mxu0 %v88_v50  ;;  %v1153_v48 = vld [vmem:[#allocation8 + $0x30] sm:$0xff]  }
  0x8d   :  { %528 = vmatprep.subr.bf16.mxu0 %v1088_v51  ;;  %v941_v51 = vld [vmem:[%s1397_s4] ss:$0 sm:$0xff]  ;;  %s1243_s4 = scalar_lea.vmem %s867_s8, 128 }
  0x8e   :  { %p1244_p4 = scmp.ne.s32.totalorder %s867_s8, %s1243_s4  ;;  %p1249_p6 = scmp.lt.s32.totalorder %s1243_s4, %s1243_s4 }
  0x90   :  { %529 = vmatpush1.bf16.msra.mxu0 %v1086_v53  ;;  %p1250_p7 = por %p1249_p6, %p1248_p5 }
  0x91   :  { %530 = vmatprep.subr.bf16.mxu0 %v1091_v54 }
  0x92   :  { %p1251_p8 = pnand %p1250_p7, %p1244_p4 }
  0x94   :  { %531 = vmatpush1.bf16.msra.mxu0 %v1089_v55 }
  0x95   :  { %532 = vmatprep.subr.bf16.mxu0 %v1094_v56 }
  0x98   :  { %533 = vmatpush1.bf16.msra.mxu0 %v1092_v57 }
  0x99   :  { %534 = vmatprep.subr.bf16.mxu0 %v1097_v58 }
  0x9c   :  { %535 = vmatpush1.bf16.msra.mxu0 %v1095_v59  ;;  %v958_v59 = vld [vmem:[%s1399_s6] ss:$0 sm:$0xff] }
  0x9d   :  { %536 = vmatprep.subr.bf16.mxu0 %v1100_v60 }
  0xa0   :  { %537 = vmatpush1.bf16.msra.mxu0 %v1098_v61 }
  0xa1   :  { %538 = vmatprep.subr.bf16.mxu0 %v1103_v62 }
  0xa4   :  { %539 = vmatpush1.bf16.msra.mxu0 %v1101_v63 }
  0xa5   :  { %540 = vmatprep.subr.bf16.mxu0 %v1106_v0 }
  0xa8   :  { %541 = vmatpush1.bf16.msra.mxu0 %v1104_v1 }
  0xa9   :  { %542 = vmatprep.subr.bf16.mxu0 %v1109_v2 }
  0xac   :  { %543 = vmatpush1.bf16.msra.mxu0 %v1107_v3 }
  0xad   :  { %544 = vmatprep.subr.bf16.mxu0 %v1112_v4 }
  0xb0   :  { %545 = vmatpush1.bf16.msra.mxu0 %v1110_v5 }
  0xb1   :  { %546 = vmatprep.subr.bf16.mxu0 %v1115_v6 }
  0xb4   :  { %547 = vmatpush1.bf16.msra.mxu0 %v1113_v7 }
  0xb5   :  { %548 = vmatprep.subr.bf16.mxu0 %v1118_v8 }
  0xb8   :  { %549 = vmatpush1.bf16.msra.mxu0 %v1116_v9 }
  0xb9   :  { %550 = vmatprep.subr.bf16.mxu0 %v1121_v10 }
  0xbc   :  { %551 = vmatpush1.bf16.msra.mxu0 %v1119_v11 }
  0xbd   :  { %552 = vmatprep.subr.bf16.mxu0 %v1124_v12 }
  0xc0   :  { %553 = vmatpush1.bf16.msra.mxu0 %v1122_v13 }
  0xc1   :  { %554 = vmatprep.subr.bf16.mxu0 %v1127_v14 }
  0xc4   :  { %555 = vmatpush1.bf16.msra.mxu0 %v1125_v15 }
  0xc5   :  { %556 = vmatprep.subr.bf16.mxu0 %v1130_v16 }
  0xc8   :  { %557 = vmatpush1.bf16.msra.mxu0 %v1128_v17 }
  0xcb   :  { %559 = vmatmul.mubr.bf16.vlgmr.msra.gmra.mrb[0].mxu0 %v87_v19 }
 0x19e   :  { %v560_v32 = vpop.f32.mrb[0].mxu0 }
 0x19f   :  { %v1018_v33 = vadd.f32 %v560_v32, %v158_v30  ;;  %v562_v34 = vpop.f32.mrb[1].mxu0 }
 0x1a0   :  { %v1019_v35 = vadd.f32 %v562_v34, %v162_v31  ;;  %v564_v36 = vpop.f32.mrb[2].mxu0 }
 0x1a1   :  { %v567_v37 = vmax.f32 %v1018_v33, 0.0  ;;  %v565_v38 = vpop.f32.mrb[3].mxu0 }
 0x1a2   :  { %v568_v39 = vmax.f32 %v1019_v35, 0.0 }
 0x1a3   :  { %v569_v42 = vpack.c.bf16 %v567_v37, %v567_v37 }
 0x1a4   :  { %v570_v40 = vpack.c.bf16 %v568_v39, %v568_v39 }
 0x1a6   :  { %738 = vmatprep.mubr.bf16.mxu1 %v570_v40 }
 0x1a7   :  { %739 = vmatmul.mubr.bf16.vlgmr.msra.gmra.mrb[0].mxu1 %v569_v42 }
 0x1a8   :  { %999 = vmatpush3.bf16.msra.mxu1 %v1147_v41  ;;  %1014 = vmatprep.mubr.msk.bf16.mxu1 %vm1282_vm0, %v1281_v24 }
 0x1a9   :  { %1000 = vmatprep.subr.bf16.mxu1 %v1281_v24 }
 0x1ac   :  { %1001 = vmatpush3.bf16.msra.mxu1 %v1148_v43 }
 0x1ad   :  { %1002 = vmatprep.subr.bf16.mxu1 %v1281_v24 }
 0x1b0   :  { %1003 = vmatpush3.bf16.msra.mxu1 %v1149_v44 }
 0x1b1   :  { %1004 = vmatprep.subr.bf16.mxu1 %v1281_v24 }
 0x1b4   :  { %1005 = vmatpush3.bf16.msra.mxu1 %v1150_v45 }
 0x1b5   :  { %1006 = vmatprep.subr.bf16.mxu1 %v1281_v24 }
 0x1b8   :  { %1007 = vmatpush3.bf16.msra.mxu1 %v1151_v46 }
 0x1b9   :  { %1008 = vmatprep.subr.bf16.mxu1 %v1281_v24 }
 0x1bc   :  { %1009 = vmatpush3.bf16.msra.mxu1 %v1152_v47 }
 0x1bd   :  { %1010 = vmatprep.subr.bf16.mxu1 %v1281_v24 }
 0x1c0   :  { %1011 = vmatpush3.bf16.msra.mxu1 %v1153_v48 }
 0x1c1   :  { %1012 = vmatprep.subr.bf16.mxu1 %v1281_v24 }
 0x1c4   :  { %1013 = vmatpush3.bf16.msra.mxu1 %v1154_v49 }
 0x27a   :  { %v983_v50 = vpop.f32.mrb[0].mxu1 }
 0x27b   :  { %v984_v52 = vpop.f32.mrb[1].mxu1 }
 0x27c   :  { %v985_v53 = vadd.f32 %v984_v52, %v983_v50  ;;  %v986_v54 = vpop.f32.mrb[2].mxu1 }
 0x27d   :  { %v987_v55 = vpop.f32.mrb[3].mxu1 }
 0x27e   :  { %v741_v56 = vadd.f32 %v985_v53, %v941_v51 }
 0x280   :  { %v746_v57 = vmax.f32 %v741_v56, 0.0 }
 0x282   :  { %v747_v58 = vpack.c.bf16 %v746_v57, %v746_v57 }
 0x284   :  { %1015 = vmatmul.mubr.bf16.vlgmr.msra.gmra.mrb[4].mxu1 %v747_v58 }
 0x357   :  { %v853_v60 = vpop.f32.mrb[4].mxu1 }
 0x358   :  { %v854_v61 = vadd.f32 %v958_v59, %v853_v60  ;;  %v1016_v62 = vpop.f32.mrb[5].mxu1 }
 0x359   :  { %v856_v63 = vpop.f32.mrb[6].mxu1 }
 0x35a   :  { %859 = vst [vmem:[#allocation10] sm:$0xff] %v854_v61  ;;  %v1017_v0 = vpop.f32.mrb[7].mxu1 }
 0x35b   :  { %1254 = shalt.err (!%p1251_p8)
}
 0x35c   :  { %s1255_s6 = scalar_lea.hbm %s1400_s7, 128 }
 0x35d   :  { %p1256_p9 = scmp.ne.s32.totalorder %s1400_s7, %s1255_s6  ;;  %p1259_p10 = scmp.lt.u32.totalorder %s1255_s6, %s1400_s7 }
 0x35f   :  { %p1261_p11 = pnand %p1259_p10, %p1256_p9 }
 0x361   :  { %1264 = shalt.err (!%p1261_p11)
}
 0x362   :  { %869 = dma.vmem_to_hbm [thread:$0]  %s867_s8, 128, %s1400_s7, [#allocation4]  }
 0x363   :  { %1271 = dma.done.wait [#allocation4], 128  }
 0x364   :  { %1272 = vsyncadd [#allocation4], 4294967168 }
 0x365   :  { %873 = vsyncpa [#allocation3], 1 }
 0x366   :  { %874 = vsyncpa [#allocation6], 1 }
 0x367   :  { %875 = vsyncpa [#allocation9], 1 }
 0x368   :  { %876 = vsyncpa [#allocation4], 1 }

</bundles_post_ra>
